<compile_context>
chip_gen: v5e
topology: v5e:2x2
jax: 0.10.0
libtpu: 0.0.40
codegen_flags: <defaults>
</compile_context>

<pallas_src>
import functools
import math

import jax
import jax.numpy as jnp
from jax import lax
from jax.experimental import pallas as pl
from jax.experimental.pallas import tpu as pltpu


# ------------------------- generation-aware budgets --------------------------

def _tpu_vmem_bytes():
    try:
        return int(pltpu.get_tpu_info().vmem_capacity_bytes)
    except Exception:
        return 64 * 1024 * 1024          # conservative (v7x-sized) fallback

_VMEM_PHYS = _tpu_vmem_bytes()
_VMEM_LIMIT = int(min(0.6 * _VMEM_PHYS, 80 * 1024 * 1024))
_BIG_VMEM = _VMEM_PHYS >= 100 * 1024 * 1024      # v5e / v6e (128 MiB) vs v7x (64 MiB)

_TM_PREF = 512 if _BIG_VMEM else 256
_TN_PREF = 512 if _BIG_VMEM else 256
_TK_PREF = 512


def _pick_tile(dim, pref, aligns):
    """Largest tile <= pref dividing dim, preferring the coarsest alignment
    (256 keeps the v6e/v7x MXU fully fed).  Falls back to the full extent,
    which is always a legal block."""
    if dim <= pref:
        return dim
    for align in aligns:
        t = (pref // align) * align
        while t >= align:
            if dim % t == 0:
                return t
            t -= align
    return dim


def _pick_frames(bt):
    for cand in (8, 4, 2, 1):
        if bt % cand == 0:
            return cand
    return 1


# ------------------------- tiled linear (+bias/act/residual) -----------------

def _linear_kernel(x_ref, w_ref, b_ref, *rest, act, nk, has_res):
    if has_res:
        r_ref, o_ref, acc_ref = rest
    else:
        o_ref, acc_ref = rest
        r_ref = None
    k = pl.program_id(2)

    @pl.when(k == 0)
    def _():
        acc_ref[...] = jnp.zeros_like(acc_ref)

    acc_ref[...] += jnp.dot(x_ref[...], w_ref[...],
                            preferred_element_type=jnp.float32)

    @pl.when(k == nk - 1)
    def _():
        y = acc_ref[...] + b_ref[...].astype(jnp.float32)
        if act == "quick_gelu":                 # CLIP QuickGELU: x*sigmoid(1.702x)
            y = y * jax.nn.sigmoid(1.702 * y)
        if has_res:
            y = y + r_ref[...].astype(jnp.float32)
        o_ref[...] = y.astype(o_ref.dtype)


def linear(x, w, b, residual=None, act="none", out_dtype=jnp.bfloat16):
    m, kdim = x.shape
    n = w.shape[1]
    tm = _pick_tile(m, _TM_PREF, (256, 128, 8))
    tn = _pick_tile(n, _TN_PREF, (256, 128))
    tk = _pick_tile(kdim, _TK_PREF, (256, 128))
    gm, gn, gk = m // tm, n // tn, kdim // tk
    has_res = residual is not None

    in_specs = [pl.BlockSpec((tm, tk), lambda i, j, k: (i, k)),
                pl.BlockSpec((tk, tn), lambda i, j, k: (k, j)),
                pl.BlockSpec((1, tn), lambda i, j, k: (0, j))]
    args = [x, w, b.reshape(1, n)]
    if has_res:
        in_specs.append(pl.BlockSpec((tm, tn), lambda i, j, k: (i, j)))
        args.append(residual)

    return pl.pallas_call(
        functools.partial(_linear_kernel, act=act, nk=gk, has_res=has_res),
        out_shape=jax.ShapeDtypeStruct((m, n), out_dtype),
        grid=(gm, gn, gk),
        in_specs=in_specs,
        out_specs=pl.BlockSpec((tm, tn), lambda i, j, k: (i, j)),
        scratch_shapes=[pltpu.VMEM((tm, tn), jnp.float32)],
        compiler_params=pltpu.CompilerParams(
            dimension_semantics=("parallel", "parallel", "arbitrary"),
            vmem_limit_bytes=_VMEM_LIMIT),
    )(*args)


# ------------------- fused LayerNorm + linear (+bias/act/residual) -----------
# The LayerNorm is computed once per row-tile (j == 0) into a VMEM scratch and
# reused for every output tile j (j axis is "arbitrary" so the scratch carry is
# legal under megacore sharding).

def _ln_linear_kernel(x_ref, g_ref, bln_ref, w_ref, b_ref, *rest,
                      act, eps, has_res):
    if has_res:
        r_ref, o_ref, xn_ref = rest
    else:
        o_ref, xn_ref = rest
        r_ref = None

    @pl.when(pl.program_id(1) == 0)
    def _():
        x = x_ref[...].astype(jnp.float32)              # LN stats in f32
        mu = jnp.mean(x, axis=-1, keepdims=True)
        xc = x - mu
        var = jnp.mean(xc * xc, axis=-1, keepdims=True)
        xn_ref[...] = ((xc * lax.rsqrt(var + eps)) * g_ref[...]
                       + bln_ref[...]).astype(xn_ref.dtype)

    y = jnp.dot(xn_ref[...], w_ref[...], preferred_element_type=jnp.float32)
    y = y + b_ref[...].astype(jnp.float32)
    if act == "quick_gelu":
        y = y * jax.nn.sigmoid(1.702 * y)
    if has_res:
        y = y + r_ref[...].astype(jnp.float32)
    o_ref[...] = y.astype(o_ref.dtype)


def ln_linear(x, g, bln, w, b, residual=None, act="none",
              out_dtype=jnp.bfloat16, eps=1e-5):
    m, kdim = x.shape
    n = w.shape[1]
    tm = _pick_tile(m, _TM_PREF, (256, 128, 8))
    tn = _pick_tile(n, _TN_PREF, (256, 128))
    gm, gn = m // tm, n // tn
    has_res = residual is not None

    in_specs = [pl.BlockSpec((tm, kdim), lambda i, j: (i, 0)),
                pl.BlockSpec((1, kdim), lambda i, j: (0, 0)),
                pl.BlockSpec((1, kdim), lambda i, j: (0, 0)),
                pl.BlockSpec((kdim, tn), lambda i, j: (0, j)),
                pl.BlockSpec((1, tn), lambda i, j: (0, j))]
    args = [x, g.reshape(1, kdim), bln.reshape(1, kdim), w, b.reshape(1, n)]
    if has_res:
        in_specs.append(pl.BlockSpec((tm, tn), lambda i, j: (i, j)))
        args.append(residual)

    return pl.pallas_call(
        functools.partial(_ln_linear_kernel, act=act, eps=eps, has_res=has_res),
        out_shape=jax.ShapeDtypeStruct((m, n), out_dtype),
        grid=(gm, gn),
        in_specs=in_specs,
        out_specs=pl.BlockSpec((tm, tn), lambda i, j: (i, j)),
        scratch_shapes=[pltpu.VMEM((tm, kdim), jnp.bfloat16)],
        compiler_params=pltpu.CompilerParams(
            dimension_semantics=("parallel", "arbitrary"),
            vmem_limit_bytes=_VMEM_LIMIT),
    )(*args)


# ------------- fused: cls concat + pos-emb add + ln_pre (+ seq pad) ----------

def _embed_ln_kernel(tok_ref, cls_ref, pos_ref, g_ref, b_ref, o_ref,
                     *, s, s_pad, eps):
    tok = tok_ref[...].astype(jnp.float32)               # (tbe, npatch, w)
    tbe, npatch, w = tok.shape
    pos = pos_ref[...]                                    # (s, w) f32
    cls_row = jnp.broadcast_to((cls_ref[...] + pos[0:1, :])[None], (tbe, 1, w))
    x = jnp.concatenate([cls_row, tok + pos[1:s, :][None]], axis=1)
    if s_pad > s:                                         # zero-pad the sequence
        x = jnp.concatenate(
            [x, jnp.zeros((tbe, s_pad - s, w), jnp.float32)], axis=1)
    mu = jnp.mean(x, axis=-1, keepdims=True)
    xc = x - mu
    var = jnp.mean(xc * xc, axis=-1, keepdims=True)
    o_ref[...] = ((xc * lax.rsqrt(var + eps)) * g_ref[...][None]
                  + b_ref[...][None]).astype(o_ref.dtype)


def embed_ln_pre(tok, class_emb, pos_emb, g, b, s_pad, eps=1e-5,
                 out_dtype=jnp.bfloat16):
    bt, npatch, width = tok.shape
    s = pos_emb.shape[0]
    tbe = _pick_frames(bt)
    return pl.pallas_call(
        functools.partial(_embed_ln_kernel, s=s, s_pad=s_pad, eps=eps),
        out_shape=jax.ShapeDtypeStruct((bt, s_pad, width), out_dtype),
        grid=(bt // tbe,),
        in_specs=[pl.BlockSpec((tbe, npatch, width), lambda i: (i, 0, 0)),
                  pl.BlockSpec((1, width), lambda i: (0, 0)),
                  pl.BlockSpec((s, width), lambda i: (0, 0)),
                  pl.BlockSpec((1, width), lambda i: (0, 0)),
                  pl.BlockSpec((1, width), lambda i: (0, 0))],
        out_specs=pl.BlockSpec((tbe, s_pad, width), lambda i: (i, 0, 0)),
        compiler_params=pltpu.CompilerParams(
            dimension_semantics=("parallel",), vmem_limit_bytes=_VMEM_LIMIT),
    )(tok,
      class_emb.reshape(1, width).astype(jnp.float32),
      pos_emb.astype(jnp.float32),
      g.reshape(1, width).astype(jnp.float32),
      b.reshape(1, width).astype(jnp.float32))


# --------------- multi-head self-attention (head-group grid axis) ------------

def _attention_kernel(q_ref, k_ref, v_ref, o_ref, *, g, dh, scale, s_valid, s_pad):
    if s_pad > s_valid:                                   # mask padded key slots
        key_ids = lax.broadcasted_iota(jnp.int32, (1, 1, s_pad), 2)
        neg = jnp.where(key_ids >= s_valid, jnp.float32(-1e30), jnp.float32(0.0))
    outs = []
    for i in range(g):                                    # g heads per grid step
        q = q_ref[:, :, i * dh:(i + 1) * dh]
        k = k_ref[:, :, i * dh:(i + 1) * dh]
        v = v_ref[:, :, i * dh:(i + 1) * dh]
        sc = lax.dot_general(q, k, (((2,), (2,)), ((0,), (0,))),
                             preferred_element_type=jnp.float32) * scale
        if s_pad > s_valid:
            sc = sc + neg
        sc = sc - jnp.max(sc, axis=-1, keepdims=True)
        p = jnp.exp(sc)
        inv = pl.reciprocal(jnp.sum(p, axis=-1, keepdims=True), approx=True)
        p = (p * inv).astype(v.dtype)
        outs.append(lax.dot_general(p, v, (((2,), (1,)), ((0,), (0,))),
                                    preferred_element_type=jnp.float32
                                    ).astype(o_ref.dtype))
    o_ref[...] = jnp.concatenate(outs, axis=-1)           # one dense 128-lane store


def attention(qkv, heads, dh, s_valid):
    bt, s_pad, threew = qkv.shape
    width = heads * dh
    assert threew == 3 * width
    # Smallest head group whose lane span is a multiple of 128 (2 heads at dh=64).
    g = 1
    while (g * dh) % 128 != 0 and g < heads:
        g += 1
    assert (g * dh) % 128 == 0 and heads % g == 0, (
        "heads * head_dim must tile into 128-lane chunks (holds for CLIP ViT-B).")
    chunk = g * dh
    n_hp = heads // g
    tb = _pick_frames(bt)
    return pl.pallas_call(
        functools.partial(_attention_kernel, g=g, dh=dh,
                          scale=1.0 / math.sqrt(dh),
                          s_valid=s_valid, s_pad=s_pad),
        out_shape=jax.ShapeDtypeStruct((bt, s_pad, width), jnp.bfloat16),
        grid=(bt // tb, n_hp),
        in_specs=[pl.BlockSpec((tb, s_pad, chunk), lambda f, hp: (f, 0, hp)),
                  pl.BlockSpec((tb, s_pad, chunk), lambda f, hp: (f, 0, n_hp + hp)),
                  pl.BlockSpec((tb, s_pad, chunk), lambda f, hp: (f, 0, 2 * n_hp + hp))],
        out_specs=pl.BlockSpec((tb, s_pad, chunk), lambda f, hp: (f, 0, hp)),
        compiler_params=pltpu.CompilerParams(
            dimension_semantics=("parallel", "parallel"),
            vmem_limit_bytes=_VMEM_LIMIT),
    )(qkv, qkv, qkv)


# ------------------------------- CLIP head -----------------------------------

def _clip_head_kernel(img_ref, txt_ref, avg_ref, scale_ref, o_ref, *, eps):
    img = img_ref[...].astype(jnp.float32)
    img = img * lax.rsqrt(jnp.sum(img * img, axis=-1, keepdims=True) + eps)
    logits = scale_ref[0] * lax.dot_general(
        img.astype(txt_ref.dtype), txt_ref[...], (((1,), (1,)), ((), ())),
        preferred_element_type=jnp.float32)
    # pred.reshape(bz, clip_len, -1).mean(1) as an averaging matmul
    o_ref[...] = jnp.dot(avg_ref[...], logits, preferred_element_type=jnp.float32)


def prepare_text_features(txt_encode, eps=1e-12):
    """Eval-time constant: L2-normalize, pad classes to a 128-lane multiple, bf16."""
    txt = txt_encode.astype(jnp.float32)
    txt = txt * lax.rsqrt(jnp.sum(txt * txt, axis=-1, keepdims=True) + eps)
    c, d = txt.shape
    c_pad = max(128, ((c + 127) // 128) * 128)
    return jnp.zeros((c_pad, d), jnp.bfloat16).at[:c].set(txt.astype(jnp.bfloat16))


def clip_head(img_feats, txt_pad, num_classes, logit_scale_exp, bz, clip_len,
              eps=1e-12):
    bt, d = img_feats.shape
    c_pad = txt_pad.shape[0]
    avg = jnp.kron(jnp.eye(bz, dtype=jnp.float32),
                   jnp.full((1, clip_len), 1.0 / clip_len, jnp.float32))   # (bz, bt)
    out = pl.pallas_call(
        functools.partial(_clip_head_kernel, eps=eps),
        out_shape=jax.ShapeDtypeStruct((bz, c_pad), jnp.float32),
        grid=(1,),
        in_specs=[pl.BlockSpec((bt, d), lambda i: (0, 0)),
                  pl.BlockSpec((c_pad, d), lambda i: (0, 0)),
                  pl.BlockSpec((bz, bt), lambda i: (0, 0)),
                  pl.BlockSpec(memory_space=pltpu.MemorySpace.SMEM)],
        out_specs=pl.BlockSpec((bz, c_pad), lambda i: (0, 0)),
        compiler_params=pltpu.CompilerParams(
            dimension_semantics=("arbitrary",), vmem_limit_bytes=_VMEM_LIMIT),
    )(img_feats, txt_pad, avg, logit_scale_exp)
    return out[:, :num_classes]


# ------------------------ CLIP visual encoder (scaled) -----------------------

CFG = dict(
    image_size=32,     # CLIP: 224
    patch_size=16,     # CLIP ViT-B/16: 16
    width=128,         # CLIP: 768
    layers=2,          # CLIP: 12
    heads=2,           # CLIP: 12  (dh = 64, same as ViT-B)
    embed_dim=128,     # CLIP: 512 joint space
    num_classes=8,     # len(all_categories)
    in_channels=3,
)


def init_params(key, cfg):
    w = cfg["width"]
    d = cfg["embed_dim"]
    c = cfg["in_channels"]
    p = cfg["patch_size"]
    s = (cfg["image_size"] // p) ** 2 + 1
    keys = iter(jax.random.split(key, 64))

    def nrm(shape, std=0.02, dtype=jnp.bfloat16):
        return (std * jax.random.normal(next(keys), shape)).astype(dtype)

    params = dict(
        conv_w=nrm((c * p * p, w)),                      # conv1 weight (bias=False)
        conv_b=jnp.zeros((w,), jnp.float32),             # kept zero (CLIP has no bias)
        class_emb=nrm((w,), dtype=jnp.float32),
        pos_emb=nrm((s, w), dtype=jnp.float32),
        ln_pre_g=jnp.ones((w,), jnp.float32), ln_pre_b=jnp.zeros((w,), jnp.float32),
        ln_post_g=jnp.ones((w,), jnp.float32), ln_post_b=jnp.zeros((w,), jnp.float32),
        proj=nrm((w, d)),                                # visual.proj (no bias)
        proj_b=jnp.zeros((d,), jnp.float32),
        txt_encode=nrm((cfg["num_classes"], d), dtype=jnp.float32),
        logit_scale=jnp.asarray(math.log(1.0 / 0.07), jnp.float32),
        alpha=jnp.ones((d,), jnp.float32),               # training-only, unused in eval
        beta=jnp.ones((d,), jnp.float32),                # training-only, unused in eval
        blocks=[],
    )
    for _ in range(cfg["layers"]):
        params["blocks"].append(dict(
            ln1_g=jnp.ones((w,), jnp.float32), ln1_b=jnp.zeros((w,), jnp.float32),
            ln2_g=jnp.ones((w,), jnp.float32), ln2_b=jnp.zeros((w,), jnp.float32),
            in_w=nrm((w, 3 * w)), in_b=jnp.zeros((3 * w,), jnp.float32),
            out_w=nrm((w, w)), out_b=jnp.zeros((w,), jnp.float32),
            fc_w=nrm((w, 4 * w)), fc_b=jnp.zeros((4 * w,), jnp.float32),
            cp_w=nrm((4 * w, w)), cp_b=jnp.zeros((w,), jnp.float32),
        ))
    return params


def encode_image(imgs, params, cfg):
    # imgs: (B*T, C, H, W) -- PyTorch NCHW frames
    bt, c, h, wd = imgs.shape
    p = cfg["patch_size"]
    width = cfg["width"]
    heads = cfg["heads"]
    dh = width // heads
    gh, gw = h // p, wd // p
    npatch = gh * gw
    s = npatch + 1
    s_pad = max(8, ((s + 7) // 8) * 8)     # pad seq -> bt*s_pad tiles cleanly

    # conv1 with stride == kernel == patch  ==>  patch extraction + tiled matmul.
    # TODO(synk): the 6-D transpose is still an XLA HBM copy; it could be absorbed
    # into the conv1 BlockSpec index_map for one more HBM-pass saving.
    x = imgs.reshape(bt, c, gh, p, gw, p)
    x = x.transpose(0, 2, 4, 1, 3, 5).reshape(bt * npatch, c * p * p)
    tok = linear(x.astype(jnp.bfloat16), params["conv_w"], params["conv_b"])
    tok = tok.reshape(bt, npatch, width)

    # cls concat + pos-emb add + ln_pre fused (sequence zero-padded to s_pad).
    x2d = embed_ln_pre(tok, params["class_emb"], params["pos_emb"],
                       params["ln_pre_g"], params["ln_pre_b"],
                       s_pad).reshape(bt * s_pad, width)        # bf16

    for blk in params["blocks"]:
        # attention sub-block: LN1+QKV fused; heads handled via a grid axis;
        # out-proj fuses the residual add.
        qkv = ln_linear(x2d, blk["ln1_g"], blk["ln1_b"], blk["in_w"], blk["in_b"])
        o = attention(qkv.reshape(bt, s_pad, 3 * width), heads, dh, s)
        x2d = linear(o.reshape(bt * s_pad, width), blk["out_w"], blk["out_b"],
                     residual=x2d)
        # MLP sub-block: LN2+FC+QuickGELU fused; MLP-out fuses the residual.
        m = ln_linear(x2d, blk["ln2_g"], blk["ln2_b"], blk["fc_w"], blk["fc_b"],
                      act="quick_gelu")
        x2d = linear(m, blk["cp_w"], blk["cp_b"], residual=x2d)

    # ln_post + visual projection fused; only the CLS tokens are projected.
    cls_tok = x2d.reshape(bt, s_pad, width)[:, 0, :]
    return ln_linear(cls_tok, params["ln_post_g"], params["ln_post_b"],
                     params["proj"], params["proj_b"],
                     out_dtype=jnp.float32)                      # (B*T, embed_dim)


def basic_clip_video_forward(x_list, labels, params, cfg):
    """Eval-path forward of BasicClipVideo (model.eval() in __init__)."""
    del labels  # unused in the eval forward path
    assert len(x_list) == 1                       # num_pathways == 1
    x = x_list[0]                                 # (B, C, T, H, W)
    bz, c, t, h, w = x.shape
    x = jnp.transpose(x, (0, 2, 1, 3, 4)).reshape(bz * t, c, h, w)
    img_encode = encode_image(x, params, cfg)     # (B*T, embed_dim) f32
    scale = jnp.exp(params["logit_scale"]).reshape(1)
    pred = clip_head(img_encode, params["txt_norm_pad"], cfg["num_classes"],
                     scale, bz, t)
    return pred                                   # (B, num_classes)


if __name__ == "__main__":
    key = jax.random.PRNGKey(0)
    k_param, k_x = jax.random.split(key)
    cfg = CFG
    params = init_params(k_param, cfg)
    # Text features are constant in eval: normalize / pad / cast once, not per-forward.
    params["txt_norm_pad"] = prepare_text_features(params["txt_encode"])

    B, C, T, H, W = 2, cfg["in_channels"], 4, cfg["image_size"], cfg["image_size"]
    x = jax.random.normal(k_x, (B, C, T, H, W), jnp.float32)
    labels = jnp.zeros((B,), jnp.int32)           # unused in eval forward

    pred = basic_clip_video_forward([x], labels, params, cfg)
    pred = jax.block_until_ready(pred)
    assert pred.shape == (B, cfg["num_classes"])
    assert bool(jnp.all(jnp.isfinite(pred)))
    print("KERNEL_OK")
</pallas_src>

<mosaic_0001>
module attributes {stable_mosaic.version = 11 : i64} {
  func.func @_linear_kernel(%arg0: i32, %arg1: i32, %arg2: i32, %arg3: memref<32x256xbf16, #tpu.memory_space<vmem>>, %arg4: memref<256x128xbf16, #tpu.memory_space<vmem>>, %arg5: memref<1x128xf32, #tpu.memory_space<vmem>>, %arg6: memref<32x128xbf16, #tpu.memory_space<vmem>>, %arg7: memref<32x128xf32, #tpu.memory_space<vmem>>) attributes {dimension_semantics = [#tpu.dimension_semantics<parallel>, #tpu.dimension_semantics<parallel>, #tpu.dimension_semantics<arbitrary>], iteration_bounds = array<i64: 1, 1, 3>, scalar_prefetch = 0 : i64, scratch_operands = 1 : i64, tpu.core_type = #tpu.core_type<tc>, window_params = [{transform_indices = @transform_0, window_bounds = array<i64: 32, 256>}, {transform_indices = @transform_1, window_bounds = array<i64: 256, 128>}, {transform_indices = @transform_2, window_bounds = array<i64: 1, 128>}, {transform_indices = @transform_3, window_bounds = array<i64: 32, 128>}]} {
    %c0_i32 = arith.constant 0 : i32
    %0 = arith.cmpi eq, %arg2, %c0_i32 : i32
    %1 = arith.extui %0 : i1 to i32
    %c0_i32_0 = arith.constant 0 : i32
    %2 = arith.cmpi ne, %1, %c0_i32_0 : i32
    scf.if %2 {
      %cst_9 = arith.constant 0.000000e+00 : f32
      %12 = vector.broadcast %cst_9 : f32 to vector<32x128xf32>
      %c0_10 = arith.constant 0 : index
      %c0_11 = arith.constant 0 : index
      %13 = vector.load %arg7[%c0_10, %c0_11] : memref<32x128xf32, #tpu.memory_space<vmem>>, vector<32x128xf32>
      tpu.vector_store %arg7[%c0_10, %c0_11], %12 {strides = array<i32>} : memref<32x128xf32, #tpu.memory_space<vmem>>, vector<32x128xf32>,
    } else {
    }
    %c0 = arith.constant 0 : index
    %c0_1 = arith.constant 0 : index
    %3 = vector.load %arg7[%c0, %c0_1] : memref<32x128xf32, #tpu.memory_space<vmem>>, vector<32x128xf32>
    %c0_2 = arith.constant 0 : index
    %c0_3 = arith.constant 0 : index
    %4 = vector.load %arg3[%c0_2, %c0_3] : memref<32x256xbf16, #tpu.memory_space<vmem>>, vector<32x256xbf16>
    %c0_4 = arith.constant 0 : index
    %c0_5 = arith.constant 0 : index
    %5 = vector.load %arg4[%c0_4, %c0_5] : memref<256x128xbf16, #tpu.memory_space<vmem>>, vector<256x128xbf16>
    %cst = arith.constant dense<0.000000e+00> : vector<32x128xf32>
    %6 = tpu.matmul %4, %5, %cst {dimension_numbers = #tpu.dot_dimension_numbers<[1], [0], [0], [1], [0, 0, 1, 1], [], []>} : vector<32x256xbf16>, vector<256x128xbf16>, vector<32x128xf32> -> vector<32x128xf32>
    %7 = arith.addf %3, %6 : vector<32x128xf32>
    %c0_6 = arith.constant 0 : index
    %c0_7 = arith.constant 0 : index
    %8 = vector.load %arg7[%c0_6, %c0_7] : memref<32x128xf32, #tpu.memory_space<vmem>>, vector<32x128xf32>
    tpu.vector_store %arg7[%c0_6, %c0_7], %7 {strides = array<i32>} : memref<32x128xf32, #tpu.memory_space<vmem>>, vector<32x128xf32>,
    %c2_i32 = arith.constant 2 : i32
    %9 = arith.cmpi eq, %arg2, %c2_i32 : i32
    %10 = arith.extui %9 : i1 to i32
    %c0_i32_8 = arith.constant 0 : i32
    %11 = arith.cmpi ne, %10, %c0_i32_8 : i32
    scf.if %11 {
      %c0_9 = arith.constant 0 : index
      %c0_10 = arith.constant 0 : index
      %12 = vector.load %arg7[%c0_9, %c0_10] : memref<32x128xf32, #tpu.memory_space<vmem>>, vector<32x128xf32>
      %c0_11 = arith.constant 0 : index
      %c0_12 = arith.constant 0 : index
      %13 = vector.load %arg5[%c0_11, %c0_12] : memref<1x128xf32, #tpu.memory_space<vmem>>, vector<1x128xf32>
      %14 = vector.broadcast %13 : vector<1x128xf32> to vector<32x128xf32>
      %15 = arith.addf %12, %14 : vector<32x128xf32>
      %16 = arith.truncf %15 : vector<32x128xf32> to vector<32x128xbf16>
      %c0_13 = arith.constant 0 : index
      %c0_14 = arith.constant 0 : index
      %17 = vector.load %arg6[%c0_13, %c0_14] : memref<32x128xbf16, #tpu.memory_space<vmem>>, vector<32x128xbf16>
      tpu.vector_store %arg6[%c0_13, %c0_14], %16 {strides = array<i32>} : memref<32x128xbf16, #tpu.memory_space<vmem>>, vector<32x128xbf16>,
    } else {
    }
    return
  }
  func.func @transform_0(%arg0: i32, %arg1: i32, %arg2: i32) -> (i32, i32) {
    %c0_i32 = arith.constant 0 : i32
    return %arg0, %arg2 : i32, i32
  }
  func.func @transform_1(%arg0: i32, %arg1: i32, %arg2: i32) -> (i32, i32) {
    %c0_i32 = arith.constant 0 : i32
    return %arg2, %arg1 : i32, i32
  }
  func.func @transform_2(%arg0: i32, %arg1: i32, %arg2: i32) -> (i32, i32) {
    %c0_i32 = arith.constant 0 : i32
    %c0_i32_0 = arith.constant 0 : i32
    return %c0_i32, %arg1 : i32, i32
  }
  func.func @transform_3(%arg0: i32, %arg1: i32, %arg2: i32) -> (i32, i32) {
    %c0_i32 = arith.constant 0 : i32
    return %arg0, %arg1 : i32, i32
  }
}

</mosaic_0001>

<bundles_post_ra>
// kernel: tpu_custom_call.1
= control target key start
LH: loop header
LB: loop body
LE: loop exit
PB: predicated region body
PF: predicated region fallthrough
CT: control target
= control target key end

     0   :  { %8 = vsyncpa [#allocation4], 0  ;;  %s1174_s0 = inlined_call_operand.hbm [shape: bf16[32,768], index: 0, kind: input, shape index: {}]   ;;  %s1175_s1 = inlined_call_operand.hbm [shape: bf16[768,128], index: 1, kind: input, shape index: {}]   ;;  %s1176_s2 = inlined_call_operand.vmem [shape: f32[1,128], index: 2, kind: input, shape index: {}]   ;;  %s1177_s3 = inlined_call_operand.hbm [shape: bf16[32,128], index: 3, kind: output, shape index: {}]  }
   0x1   :  { %10 = vsyncpa [#allocation4 + $0x1], 0 }
   0x2   :  { %11 = vsyncpa [#allocation7], 0 }
   0x3   :  { %13 = vsyncpa [#allocation7 + $0x1], 0 }
   0x4   :  { %14 = vsyncpa [#allocation5], 0  ;;  %s1029_s12 = smov 0   ;;  %s1031_s13 = smov 0  }
   0x5   :  { %s1033_s14 = smov 0   ;;  %s1035_s15 = smov 0  }
   0x6   :  { %s1037_s16 = smov 0   ;;  %s1039_s17 = smov 0  }
   0x7 LB: > { %s1178_s18 = sadd.s32 4294967295, %s998_s17   ;;  %s32_s19 = sadd.s32 1, %s994_s16  ;;  %s998_s17 = sphi %s1039_s17, %s20_s17   ;;  %s994_s16 = sphi %s1037_s16, %s1187_s16   ;;  %s990_s15 = sphi %s1035_s15, %s1186_s15   ;;  %s986_s14 = sphi %s1033_s14, %s1185_s14   ;;  %s982_s13 = sphi %s1031_s13, %s1184_s13   ;;  %s978_s12 = sphi %s1029_s12, %s1183_s12  }
   0x8   : > { %p33_p0 = scmp.ge.s32.totalorder %s32_s19, 3  ;;  %s48_s20 = sadd.s32 1, %s986_s14 }
   0x9   : > { %p55_p1 = scmp.ne.s32.totalorder %s986_s14, %s982_s13  ;;  %p56_p2 = scmp.eq.s32.totalorder %s998_s17, 0 }
   0xa   : > { %s1189_s19 = smov (%p33_p0, %s32_s19), 0  ;;  %p61_p4 = scmp.ne.s32.totalorder %s982_s13, %s978_s12 }
   0xb   : > { %p1065_p3 = por %p56_p2, %p55_p1  ;;  %s44_s22 = ssub.s32 %s994_s16, %s1189_s19 }
   0xc   : > { %p62_p5 = scmp.eq.s32.totalorder %s1178_s18, 0  ;;  %p46_p6 = scmp.eq.s32.totalorder %s44_s22, 0 }
   0xd   : > { %p791_p8 = scmp.lt.s32.totalorder %s998_s17, 3  ;;  %s1083_s25 = sand.u32 1, %s986_s14  }
   0xe   : > { %p1074_p7 = por %p62_p5, %p61_p4  ;;  %s727_s26 = sshll.u32 %s994_s16, 3 }
   0xf   : > { %s1080_s24 = scalar_select %p46_p6, %s986_s14, %s48_s20  }
  0x10   : > { %s632_s27 = sshll.u32 %s1083_s25, 5  ;;  %s185_s30 = scalar_lea.hbm %s1174_s0, %s727_s26 }
  0x11   : > { %s186_s4 = sshll.u32 %s185_s30, 4  ;;  %s177_s5 = scalar_lea.vmem [#allocation3], %s632_s27  ;;  %s187_s4 = int_to_ptr.hbm [resolvable:$true] %s186_s4 }
  0x12   : > { %s188_s6 = sshll.u32 %s177_s5, 4  ;;  %p1092_p9 = pnand %p791_p8, %p1065_p3  ;;  %s189_s6 = int_to_ptr.vmem [resolvable:$true] %s188_s6 }
  0x13   : > { %p638_p10 = scmp.ge.s32.totalorder %s998_s17, 1  ;;  %s174_s8 = scalar_lea.sflag [#allocation4], %s1083_s25 }
  0x14   : > { %s1000_s9 = smov 384   ;;  %s1001_s10 = smov 128  }
  0x15   : > { %s1002_s11 = smov 8   ;;  %p219_p11 = scmp.lt.s32.totalorder %s998_s17, 4 }
  0x16   : > { %787 = dma.hbm_to_vmem [thread:$0]  (!%p1092_p9), %s187_s4, 512, %s189_s6, %s174_s8, %s1000_s9, %s1001_s10, %s1002_s11  }
  0x17   : > { %s635_s12 = sshll.u32 %s1083_s25, 7  ;;  %s728_s20 = sshll.u32 %s994_s16, 7 }
  0x18   : > { %p220_p12 = pnand %p638_p10, %p219_p11  ;;  %s208_s26 = scalar_lea.hbm %s1175_s1, %s728_s20 }
  0x19   : > { %s202_s27 = scalar_lea.vmem [#allocation6], %s635_s12  ;;  %s209_s29 = sshll.u32 %s208_s26, 4  ;;  %s210_s29 = int_to_ptr.hbm [resolvable:$true] %s209_s29 }
  0x1a   : > { %s211_s28 = sshll.u32 %s202_s27, 4  ;;  %s199_s30 = scalar_lea.sflag [#allocation7], %s1083_s25  ;;  %s212_s28 = int_to_ptr.vmem [resolvable:$true] %s211_s28 }
  0x1b   : > { %s1003_s5 = smov 64   ;;  %s1004_s18 = smov 4  }
  0x1c   : > { %790 = dma.hbm_to_vmem [thread:$0]  (!%p1092_p9), %s210_s29, 2048, %s212_s28, %s199_s30, %s1003_s5, %s1003_s5, %s1004_s18  }
  0x1d   : > { %223 = sbr.rel (%p220_p12) target bundleno = 247 (0xf7), region = 32  ;;  %s225_s4 = sand.u32 (!%p220_p12), 1, %s982_s13  }
  0x1e   : > { %s639_s6 = sshll.u32 (!%p220_p12), %s225_s4, 5  ;;  %s226_s8 = scalar_lea.sflag (!%p220_p12), [#allocation4], %s225_s4 }
  0x1f   : > { %s1110_s9 = scalar_lea.vmem (!%p220_p12), [#allocation3], %s639_s6 }
  0x22   : > { %965 = dma.done.wait (%p1074_p7), %s226_s8, 512  }
  0x23   : > { %967 = vsyncadd (%p1074_p7), %s226_s8, 4294966784  ;;  %s640_s10 = sshll.u32 %s225_s4, 7  ;;  %s236_s25 = scalar_lea.sflag [#allocation7], %s225_s4 }
  0x24   : > { %s1116_s11 = scalar_lea.vmem [#allocation6], %s640_s10 }
  0x25   : > { %969 = dma.done.wait (%p1074_p7), %s236_s25, 2048  }
  0x26   : > { %971 = vsyncadd (%p1074_p7), %s236_s25, 4294965248  ;;  %p641_p13 = scmp.ne.s32.totalorder %s990_s15, 0 }
  0x28   : > { %276 = sbr.rel (%p641_p13) target bundleno = 50 (0x32), region = 44 }
  0x2d   : > { %v1005_v0 = vmov 0.0  }
  0x2e   : > { %277 = vst [vmem:[#allocation2 + $0x10] sm:$0xff] %v1005_v0 }
  0x2f   : > { %278 = vst [vmem:[#allocation2] sm:$0xff] %v1005_v0 }
  0x30   : > { %279 = vst [vmem:[#allocation2 + $0x18] sm:$0xff] %v1005_v0 }
  0x31   : > { %280 = vst [vmem:[#allocation2 + $0x8] sm:$0xff] %v1005_v0 }
  0x32 PF: > { %v740_v1 = vld [vmem:[%s1116_s11 + $0x38] sm:$0xff]  ;;  %v739_v3 = vld [vmem:[%s1116_s11 + $0x30] sm:$0xff]  ;;  %v738_v5 = vld [vmem:[%s1116_s11 + $0x28] sm:$0xff]  ;;  %p722_p0 = scmp.ne.s32.totalorder %s990_s15, 2 }
  0x33   : > { %v748_v2 = vld [vmem:[%s1116_s11 + $0x78] sm:$0xff]  ;;  %437 = vmatpush.bf16.msra.mxu0 %v740_v1  ;;  %760 = vmatpush.bf16.msra.mxu2 %v740_v1  ;;  %v747_v4 = vld [vmem:[%s1116_s11 + $0x70] sm:$0xff]  ;;  %v746_v6 = vld [vmem:[%s1116_s11 + $0x68] sm:$0xff] }
  0x34   : > { %456 = vmatpush.bf16.msra.mxu1 %v748_v2  ;;  %768 = vmatpush.bf16.msra.mxu3 %v748_v2  ;;  %v737_v7 = vld [vmem:[%s1116_s11 + $0x20] sm:$0xff]  ;;  %v736_v9 = vld [vmem:[%s1116_s11 + $0x18] sm:$0xff]  ;;  %v735_v11 = vld [vmem:[%s1116_s11 + $0x10] sm:$0xff] }
  0x35   : > { %v745_v8 = vld [vmem:[%s1116_s11 + $0x60] sm:$0xff]  ;;  %v744_v10 = vld [vmem:[%s1116_s11 + $0x58] sm:$0xff]  ;;  %v743_v12 = vld [vmem:[%s1116_s11 + $0x50] sm:$0xff] }
  0x36   : > { %v734_v13 = vld [vmem:[%s1116_s11 + $0x8] sm:$0xff]  ;;  %v733_v15 = vld [vmem:[%s1116_s11] sm:$0xff]  ;;  %v652_v19 = vld [vmem:[%s1110_s9 + $0x10] sm:$0xf] }
  0x37   : > { %438 = vmatpush.bf16.msra.mxu0 %v739_v3  ;;  %761 = vmatpush.bf16.msra.mxu2 %v739_v3  ;;  %v742_v14 = vld [vmem:[%s1116_s11 + $0x48] sm:$0xff]  ;;  %v741_v16 = vld [vmem:[%s1116_s11 + $0x40] sm:$0xff]  ;;  %v732_v20 = vld [vmem:[%s1110_s9 + $0x14] sm:$0xf0] }
  0x38   : > { %457 = vmatpush.bf16.msra.mxu1 %v747_v4  ;;  %769 = vmatpush.bf16.msra.mxu3 %v747_v4  ;;  %v644_v17 = vld [vmem:[%s1110_s9] sm:$0xf]  ;;  %v730_v18 = vld [vmem:[%s1110_s9 + $0x4] sm:$0xf0]  ;;  %v729_v21 = vld [vmem:[%s1110_s9 + $0x4] sm:$0xf]  ;;  %v653_v26 = vor.u32 %v732_v20, %v652_v19 }
  0x39   : > { %v646_v22 = vld [vmem:[%s1110_s9 + $0x8] sm:$0xf0]  ;;  %v731_v23 = vld [vmem:[%s1110_s9 + $0x14] sm:$0xf]  ;;  %v654_v24 = vld [vmem:[%s1110_s9 + $0x18] sm:$0xf0]  ;;  %v645_v25 = vor.u32 %v730_v18, %v644_v17 }
  0x3a   : > { %v649_v27 = vor.u32 %v729_v21, %v646_v22  ;;  %v657_v28 = vor.u32 %v731_v23, %v654_v24  ;;  %v281_v30 = vld [vmem:[#allocation2 + $0x10] sm:$0xff]  ;;  %v283_v35 = vld [vmem:[#allocation2 + $0x18] sm:$0xff]  ;;  %v282_v39 = vld [vmem:[#allocation2] sm:$0xff] }
  0x3b   : > { %439 = vmatpush.bf16.msra.mxu0 %v738_v5  ;;  %762 = vmatpush.bf16.msra.mxu2 %v738_v5  ;;  %v284_v45 = vld [vmem:[#allocation2 + $0x8] sm:$0xff] }
  0x3c   : > { %458 = vmatpush.bf16.msra.mxu1 %v746_v6  ;;  %770 = vmatpush.bf16.msra.mxu3 %v746_v6 }
  0x3f   : > { %440 = vmatpush.bf16.msra.mxu0 %v737_v7  ;;  %763 = vmatpush.bf16.msra.mxu2 %v737_v7 }
  0x40   : > { %459 = vmatpush.bf16.msra.mxu1 %v745_v8  ;;  %771 = vmatpush.bf16.msra.mxu3 %v745_v8 }
  0x43   : > { %441 = vmatpush.bf16.msra.mxu0 %v736_v9  ;;  %764 = vmatpush.bf16.msra.mxu2 %v736_v9 }
  0x44   : > { %460 = vmatpush.bf16.msra.mxu1 %v744_v10  ;;  %772 = vmatpush.bf16.msra.mxu3 %v744_v10 }
  0x47   : > { %442 = vmatpush.bf16.msra.mxu0 %v735_v11  ;;  %765 = vmatpush.bf16.msra.mxu2 %v735_v11 }
  0x48   : > { %461 = vmatpush.bf16.msra.mxu1 %v743_v12  ;;  %773 = vmatpush.bf16.msra.mxu3 %v743_v12 }
  0x4b   : > { %443 = vmatpush.bf16.msra.mxu0 %v734_v13  ;;  %766 = vmatpush.bf16.msra.mxu2 %v734_v13 }
  0x4c   : > { %462 = vmatpush.bf16.msra.mxu1 %v742_v14  ;;  %774 = vmatpush.bf16.msra.mxu3 %v742_v14 }
  0x4f   : > { %444 = vmatpush.bf16.msra.mxu0 %v733_v15  ;;  %767 = vmatpush.bf16.msra.mxu2 %v733_v15 }
  0x50   : > { %463 = vmatpush.bf16.msra.mxu1 %v741_v16  ;;  %775 = vmatpush.bf16.msra.mxu3 %v741_v16 }
  0x52   : > { %445 = vmatmul.bf16.vlgmr.msra.gmra.mxu0 %v645_v25  ;;  %450 = vmatmul.bf16.vlgmr.msra.gmra.mxu2 %v653_v26 }
  0x53   : > { %464 = vmatmul.bf16.vlgmr.msra.gmra.mxu1 %v649_v27  ;;  %469 = vmatmul.bf16.vlgmr.msra.gmra.mxu3 %v657_v28 }
  0xcf   : > { %v446_v29 = vpop.f32.mrf.mxu0 }
  0xd0   : > { %v465_v31 = vpop.f32.mrf.mxu1 }
  0xd1   : > { %v466_v32 = vadd.f32 %v465_v31, %v446_v29 }
  0xd3   : > { %v475_v33 = vadd.f32 %v466_v32, %v281_v30 }
  0xd5   : > { %479 = vst [vmem:[#allocation2 + $0x10] sm:$0xff] %v475_v33  ;;  %v451_v34 = vpop.f32.mrf.mxu2 }
  0xd6   : > { %v470_v36 = vpop.f32.mrf.mxu3 }
  0xd7   : > { %v471_v37 = vadd.f32 %v470_v36, %v451_v34  ;;  %v448_v38 = vpop.f32.mrf.mxu0 }
  0xd8   : > { %v467_v40 = vpop.f32.mrf.mxu1 }
  0xd9   : > { %v477_v41 = vadd.f32 %v471_v37, %v283_v35  ;;  %v468_v42 = vadd.f32 %v467_v40, %v448_v38 }
  0xdb   : > { %481 = vst [vmem:[#allocation2 + $0x18] sm:$0xff] %v477_v41  ;;  %v476_v43 = vadd.f32 %v468_v42, %v282_v39 }
  0xdd   : > { %480 = vst [vmem:[#allocation2] sm:$0xff] %v476_v43  ;;  %v453_v44 = vpop.f32.mrf.mxu2 }
  0xde   : > { %v472_v46 = vpop.f32.mrf.mxu3 }
  0xdf   : > { %v473_v47 = vadd.f32 %v472_v46, %v453_v44  ;;  %486 = sbr.rel (%p722_p0) target bundleno = 240 (0xf0), region = 48 }
  0xe1   : > { %v478_v48 = vadd.f32 %v473_v47, %v284_v45 }
  0xe3   : > { %482 = vst [vmem:[#allocation2 + $0x8] sm:$0xff] %v478_v48 }
  0xe4   : > { %v487_v49 = vld [vmem:[#allocation2 + $0x10] sm:$0xff]  ;;  %v488_v50 = vld [vmem:[#allocation2] sm:$0xff]  ;;  %v489_v52 = vld [vmem:[#allocation2 + $0x18] sm:$0xff] }
  0xe5   : > { %v851_v51 = vld [vmem:[%s1176_s2] ss:$0 sm:$0xff] }
  0xe6   : > { %v495_v54 = vadd.f32 %v851_v51, %v487_v49  ;;  %v496_v55 = vadd.f32 %v851_v51, %v488_v50  ;;  %v497_v56 = vadd.f32 %v851_v51, %v489_v52 }
  0xe8   : > { %v752_v58 = vpack.c.bf16 %v496_v55, %v495_v54 }
  0xea   : > { %v490_v53 = vld [vmem:[#allocation2 + $0x8] sm:$0xff]  ;;  %753 = vst [vmem:[#allocation8] sm:$0xff] %v752_v58  }
  0xeb   : > { %v498_v57 = vadd.f32 %v851_v51, %v490_v53 }
  0xed   : > { %v757_v59 = vpack.c.bf16 %v498_v57, %v497_v56 }
  0xef   : > { %759 = vst [vmem:[#allocation8 + $0x8] sm:$0xff] %v757_v59  }
  0xf0 PF: > { %s1182_s15 = sadd.s32 4294967295, %s998_s17   ;;  %s518_s20 = sshll.u32 %s1177_s3, 4  ;;  %s519_s20 = int_to_ptr.hbm [resolvable:$true] %s518_s20 }
  0xf1   : > { %p792_p1 = scmp.eq.s32.totalorder %s1182_s15, 2  ;;  %s1006_s22 = smov [#allocation8]  }
  0xf2   : > { %s516_s21 = sshll.u32 %s1006_s22, 4  ;;  %s1007_s26 = smov 64   ;;  %s517_s21 = int_to_ptr.vmem [resolvable:$true] %s516_s21 }
  0xf3   : > { %s1008_s27 = smov 4  }
  0xf4   : > { %781 = dma.vmem_to_hbm [thread:$0]  (%p792_p1), %s517_s21, 256, %s519_s20, [#allocation5], %s1007_s26, %s1007_s26, %s1008_s27  }
  0xf5   : > { %973 = dma.done.wait (%p792_p1), [#allocation5], 256  }
  0xf6   : > { %975 = vsyncadd (%p792_p1), [#allocation5], 4294967040 }
  0xf7 PF: > { %s20_s17 = sadd.s32 1, %s998_s17   ;;  %s1183_s12 = smov %s982_s13 }
  0xf8   : > { %p17_p2 = scmp.ge.s32.totalorder %s20_s17, 5   ;;  %s1184_s13 = smov %s986_s14 }
  0xf9   : > { %s1185_s14 = smov %s1080_s24  ;;  %s1186_s15 = smov %s994_s16 }
  0xfa   : > { %s1187_s16 = smov %s1189_s19  ;;  %19 = sbr.rel (!%p17_p2) target bundleno = 7 (0x7), region = 94 }
  0xff   :  { %535 = vsyncpa [#allocation4], 1 }
 0x100   :  { %537 = vsyncpa [#allocation4 + $0x1], 1 }
 0x101   :  { %538 = vsyncpa [#allocation7], 1 }
 0x102   :  { %540 = vsyncpa [#allocation7 + $0x1], 1 }
 0x103   :  { %541 = vsyncpa [#allocation5], 1 }
 0x104   :  { %543 = vsyncpa [#allocation5 + $0x1], 1 }

</bundles_post_ra>
